<compile_context>
chip_gen: v5e
topology: v5e:2x2
jax: 0.10.0
libtpu: 0.0.40
codegen_flags: <defaults>
</compile_context>

<pallas_src>
import functools

import jax
import jax.numpy as jnp
from jax.experimental import pallas as pl
from jax.experimental.pallas import tpu as pltpu


def _actor_critic_kernel(
    state_ref, action_ref,
    w1_ref, b1_ref, w2_ref, b2_ref, w3_ref, b3_ref,
    out_ref, *, action_dim,
):
    # state_ref: [TB, S] (natural layout); activations carried as [2H, TB] so
    # the batch sits on the 128-lane axis.
    x = state_ref[...].astype(jnp.bfloat16)                      # [TB, S] bf16

    # layer 1: contract over S -> [2H, TB]  (bf16 inputs, f32 MXU accumulate)
    h = jax.lax.dot_general(w1_ref[...], x,
                            (((1,), (1,)), ((), ())),
                            preferred_element_type=jnp.float32)
    h = jnp.tanh(h + b1_ref[...])                                 # f32 [2H, TB]

    # layer 2: fused block-diagonal actor/critic matmul (2H=64 <= MXU native)
    h = jnp.dot(w2_ref[...], h.astype(jnp.bfloat16),
                preferred_element_type=jnp.float32)
    h = jnp.tanh(h + b2_ref[...])                                 # f32 [2H, TB]

    # layer 3: [A+1, 2H] x [2H, TB] -> rows 0..A-1 = logits, row A = value
    o = jnp.dot(w3_ref[...], h.astype(jnp.bfloat16),
                preferred_element_type=jnp.float32) + b3_ref[...]  # [A+1, TB]

    logits = o[:action_dim, :]                                     # [A, TB]
    value = o[action_dim:action_dim + 1, :]                        # [1, TB]

    # numerically-stable softmax pieces over the (sublane) action axis
    m = jnp.max(logits, axis=0, keepdims=True)                     # [1, TB]
    z = logits - m                                                 # [A, TB]
    e = jnp.exp(z)
    denom = jnp.sum(e, axis=0, keepdims=True)                      # [1, TB]
    log_denom = jnp.log(denom)

    # dist.entropy() = log(denom) - sum(e*z)/denom   (exact, no approx recip)
    ent = log_denom - jnp.sum(e * z, axis=0, keepdims=True) / denom

    # dist.log_prob(action): one-hot gather along the action (sublane) axis
    a = action_ref[...]                                            # [1, TB] i32
    row = jax.lax.broadcasted_iota(jnp.int32, z.shape, 0)
    onehot = (row == a).astype(jnp.float32)
    logp = jnp.sum(onehot * z, axis=0, keepdims=True) - log_denom  # [1, TB]

    # single lane-dense [3, TB] store: rows = (logp, value, entropy)
    out_ref[...] = jnp.concatenate([logp, value, ent], axis=0)


def _round_up(x, m):
    return ((x + m - 1) // m) * m


_TB_CAP = 8192  # per-step footprint stays <1 MiB even double-buffered


def _choose_batch_tile(B):
    """Lane-aligned batch tile; >=2 grid blocks when B > 128 (v7x megacore)."""
    if B <= 128:
        return 128
    tb = _round_up(-(-B // 2), 128)     # ceil(B/2) rounded to lane width
    return min(tb, _TB_CAP)


@functools.partial(jax.jit, static_argnames=("action_dim",))
def actor_critic_evaluate(state, action, fused_params, *, action_dim):
    """Pallas equivalent of ActorCritic.evaluate(state, action).

    Returns (action_logprobs [B], state_value [B], dist_entropy [B])."""
    B, S = state.shape
    W1, b1, W2, b2, W3, b3 = fused_params
    H2 = W1.shape[0]                      # 2 * n_latent_var

    TB = _choose_batch_tile(B)
    Bp = _round_up(B, TB)
    nb = Bp // TB

    # No transpose pass; only zero-pad the batch when it is not a tile multiple.
    if Bp == B:
        state_p = state
        action2d = action.astype(jnp.int32)[None, :]
    else:
        state_p = jnp.zeros((Bp, S), jnp.float32).at[:B, :].set(state)
        action2d = jnp.zeros((1, Bp), jnp.int32).at[0, :B].set(
            action.astype(jnp.int32))

    kernel = functools.partial(_actor_critic_kernel, action_dim=action_dim)

    def weight_spec(arr):
        # constant index_map -> weights stay resident across the grid
        return pl.BlockSpec(arr.shape, lambda i: (0, 0))

    flops = 2 * Bp * (S * H2 + H2 * H2 + H2 * (action_dim + 1))
    transcendentals = Bp * (2 * H2 + action_dim + 1)   # tanh x2 + exp + log
    bytes_accessed = (4 * (S * Bp + Bp + 3 * Bp)       # state + action + out
                      + 2 * (W1.size + W2.size + W3.size)   # bf16 weights
                      + 4 * (b1.size + b2.size + b3.size))

    out = pl.pallas_call(
        kernel,
        out_shape=jax.ShapeDtypeStruct((3, Bp), jnp.float32),
        grid=(nb,),
        in_specs=[
            pl.BlockSpec((TB, S), lambda i: (i, 0)),        # state tile [TB,S]
            pl.BlockSpec((1, TB), lambda i: (0, i)),        # action tile
            weight_spec(W1), weight_spec(b1),
            weight_spec(W2), weight_spec(b2),
            weight_spec(W3), weight_spec(b3),
        ],
        out_specs=pl.BlockSpec((3, TB), lambda i: (0, i)),  # lane-dense output
        compiler_params=pltpu.CompilerParams(
            dimension_semantics=("parallel",)),
        cost_estimate=pl.CostEstimate(
            flops=flops,
            transcendentals=transcendentals,
            bytes_accessed=bytes_accessed),
    )(state_p, action2d, W1, b1, W2, b2, W3, b3)

    return out[0, :B], out[1, :B], out[2, :B]


def init_params(key, state_dim, action_dim, n_latent_var):
    """PyTorch nn.Linear-style init; weights stored PyTorch-style [out, in]."""
    def linear(k, fan_in, fan_out):
        kw, kb = jax.random.split(k)
        bound = 1.0 / jnp.sqrt(jnp.float32(fan_in))
        w = jax.random.uniform(kw, (fan_out, fan_in), jnp.float32, -bound, bound)
        b = jax.random.uniform(kb, (fan_out,), jnp.float32, -bound, bound)
        return w, b

    keys = jax.random.split(key, 6)
    w1a, b1a = linear(keys[0], state_dim, n_latent_var)       # actor
    w2a, b2a = linear(keys[1], n_latent_var, n_latent_var)
    w3a, b3a = linear(keys[2], n_latent_var, action_dim)
    w1v, b1v = linear(keys[3], state_dim, n_latent_var)       # critic
    w2v, b2v = linear(keys[4], n_latent_var, n_latent_var)
    w3v, b3v = linear(keys[5], n_latent_var, 1)
    return (w1a, b1a, w2a, b2a, w3a, b3a, w1v, b1v, w2v, b2v, w3v, b3v)


def fuse_params(params, state_dim, action_dim, n_latent_var):
    """Fused actor+critic weights (concat / block-diagonal), [out, in], bf16.

    NOTE: the block-diagonal layer-2 fusion is only free while
    2*n_latent_var <= MXU native width (128 on v5e, 256 on v6e/v7x); above
    that, run two separate [H,H] dots instead.
    """
    (w1a, b1a, w2a, b2a, w3a, b3a, w1v, b1v, w2v, b2v, w3v, b3v) = params
    H = n_latent_var
    W1 = jnp.concatenate([w1a, w1v], axis=0)                     # [2H, S]
    b1 = jnp.concatenate([b1a, b1v], axis=0)[:, None]            # [2H, 1]
    W2 = jnp.zeros((2 * H, 2 * H), jnp.float32)
    W2 = W2.at[:H, :H].set(w2a).at[H:, H:].set(w2v)              # block-diag
    b2 = jnp.concatenate([b2a, b2v], axis=0)[:, None]            # [2H, 1]
    W3 = jnp.zeros((action_dim + 1, 2 * H), jnp.float32)
    W3 = W3.at[:action_dim, :H].set(w3a).at[action_dim:, H:].set(w3v)
    b3 = jnp.concatenate([b3a, b3v], axis=0)[:, None]            # [A+1, 1]
    return (W1.astype(jnp.bfloat16), b1,
            W2.astype(jnp.bfloat16), b2,
            W3.astype(jnp.bfloat16), b3)


def _reference_f32(state, action, params):
    """Plain-JAX full-f32 reference (mirrors the PyTorch module exactly)."""
    (w1a, b1a, w2a, b2a, w3a, b3a, w1v, b1v, w2v, b2v, w3v, b3v) = params
    h = jnp.tanh(state @ w1a.T + b1a)
    h = jnp.tanh(h @ w2a.T + b2a)
    logits = h @ w3a.T + b3a
    logp_all = jax.nn.log_softmax(logits, axis=-1)
    probs = jnp.exp(logp_all)
    ent = -jnp.sum(probs * logp_all, axis=-1)
    logp = jnp.take_along_axis(logp_all, action[:, None], axis=-1)[:, 0]
    hv = jnp.tanh(state @ w1v.T + b1v)
    hv = jnp.tanh(hv @ w2v.T + b2v)
    value = (hv @ w3v.T + b3v)[:, 0]
    return logp, value, ent


def _reference_bf16(state, action, params):
    """Reference at the kernel's precision: bf16 matmul inputs, f32 accumulate."""
    def mm(a, b):
        return jnp.dot(a.astype(jnp.bfloat16), b.astype(jnp.bfloat16),
                       preferred_element_type=jnp.float32)

    (w1a, b1a, w2a, b2a, w3a, b3a, w1v, b1v, w2v, b2v, w3v, b3v) = params
    h = jnp.tanh(mm(state, w1a.T) + b1a)
    h = jnp.tanh(mm(h, w2a.T) + b2a)
    logits = mm(h, w3a.T) + b3a
    logp_all = jax.nn.log_softmax(logits, axis=-1)
    probs = jnp.exp(logp_all)
    ent = -jnp.sum(probs * logp_all, axis=-1)
    logp = jnp.take_along_axis(logp_all, action[:, None], axis=-1)[:, 0]
    hv = jnp.tanh(mm(state, w1v.T) + b1v)
    hv = jnp.tanh(mm(hv, w2v.T) + b2v)
    value = (mm(hv, w3v.T) + b3v)[:, 0]
    return logp, value, ent


if __name__ == "__main__":
    # TODO(synk): act()'s Categorical sampling + Memory bookkeeping is host-side
    # control flow and is intentionally not implemented in the kernel.
    state_dim, action_dim, n_latent_var = 4, 6, 32
    batch = 8

    key = jax.random.PRNGKey(0)
    k_params, k_state, k_action = jax.random.split(key, 3)

    params = init_params(k_params, state_dim, action_dim, n_latent_var)
    fused = fuse_params(params, state_dim, action_dim, n_latent_var)

    state = jax.random.normal(k_state, (batch, state_dim), jnp.float32)
    action = jax.random.randint(k_action, (batch,), 0, action_dim, jnp.int32)

    logp, value, ent = actor_critic_evaluate(state, action, fused,
                                             action_dim=action_dim)
    jax.block_until_ready((logp, value, ent))

    # 1) strict check against a reference at the kernel's working precision
    logp_b, value_b, ent_b = _reference_bf16(state, action, params)
    assert jnp.allclose(logp, logp_b, atol=2e-3), "logprob mismatch (bf16 ref)"
    assert jnp.allclose(value, value_b, atol=2e-3), "value mismatch (bf16 ref)"
    assert jnp.allclose(ent, ent_b, atol=2e-3), "entropy mismatch (bf16 ref)"

    # 2) looser check against the exact f32 module semantics (bf16 MXU inputs
    #    introduce ~1e-2-scale differences at most)
    logp_r, value_r, ent_r = _reference_f32(state, action, params)
    assert jnp.allclose(logp, logp_r, atol=3e-2), "logprob mismatch (f32 ref)"
    assert jnp.allclose(value, value_r, atol=3e-2), "value mismatch (f32 ref)"
    assert jnp.allclose(ent, ent_r, atol=3e-2), "entropy mismatch (f32 ref)"

    print("KERNEL_OK")
</pallas_src>

<mosaic_0001>
module attributes {stable_mosaic.version = 11 : i64} {
  func.func @_actor_critic_kernel(%arg0: i32, %arg1: memref<128x4xf32, #tpu.memory_space<vmem>>, %arg2: memref<1x128xi32, #tpu.memory_space<vmem>>, %arg3: memref<64x4xbf16, #tpu.memory_space<vmem>>, %arg4: memref<64x1xf32, #tpu.memory_space<vmem>>, %arg5: memref<64x64xbf16, #tpu.memory_space<vmem>>, %arg6: memref<64x1xf32, #tpu.memory_space<vmem>>, %arg7: memref<7x64xbf16, #tpu.memory_space<vmem>>, %arg8: memref<7x1xf32, #tpu.memory_space<vmem>>, %arg9: memref<3x128xf32, #tpu.memory_space<vmem>>) attributes {dimension_semantics = [#tpu.dimension_semantics<parallel>], iteration_bounds = array<i64: 1>, scalar_prefetch = 0 : i64, scratch_operands = 0 : i64, tpu.core_type = #tpu.core_type<tc>, window_params = [{transform_indices = @transform_0, window_bounds = array<i64: 128, 4>}, {transform_indices = @transform_1, window_bounds = array<i64: 1, 128>}, {pipeline_mode = #tpu.pipeline_mode<synchronous>, transform_indices = @transform_2, window_bounds = array<i64: 64, 4>}, {pipeline_mode = #tpu.pipeline_mode<synchronous>, transform_indices = @transform_3, window_bounds = array<i64: 64, 1>}, {pipeline_mode = #tpu.pipeline_mode<synchronous>, transform_indices = @transform_4, window_bounds = array<i64: 64, 64>}, {pipeline_mode = #tpu.pipeline_mode<synchronous>, transform_indices = @transform_5, window_bounds = array<i64: 64, 1>}, {pipeline_mode = #tpu.pipeline_mode<synchronous>, transform_indices = @transform_6, window_bounds = array<i64: 7, 64>}, {pipeline_mode = #tpu.pipeline_mode<synchronous>, transform_indices = @transform_7, window_bounds = array<i64: 7, 1>}, {transform_indices = @transform_8, window_bounds = array<i64: 3, 128>}]} {
    %c0 = arith.constant 0 : index
    %c0_0 = arith.constant 0 : index
    %0 = vector.load %arg1[%c0, %c0_0] : memref<128x4xf32, #tpu.memory_space<vmem>>, vector<128x4xf32>
    %1 = arith.truncf %0 : vector<128x4xf32> to vector<128x4xbf16>
    %c0_1 = arith.constant 0 : index
    %c0_2 = arith.constant 0 : index
    %2 = vector.load %arg3[%c0_1, %c0_2] : memref<64x4xbf16, #tpu.memory_space<vmem>>, vector<64x4xbf16>
    %cst = arith.constant dense<0.000000e+00> : vector<64x128xf32>
    %3 = tpu.matmul %2, %1, %cst {dimension_numbers = #tpu.dot_dimension_numbers<[1], [1], [0], [0], [0, 0, 1, 0], [], []>} : vector<64x4xbf16>, vector<128x4xbf16>, vector<64x128xf32> -> vector<64x128xf32>
    %c0_3 = arith.constant 0 : index
    %c0_4 = arith.constant 0 : index
    %4 = vector.load %arg4[%c0_3, %c0_4] : memref<64x1xf32, #tpu.memory_space<vmem>>, vector<64x1xf32>
    %5 = vector.broadcast %4 : vector<64x1xf32> to vector<64x128xf32>
    %6 = arith.addf %3, %5 : vector<64x128xf32>
    %7 = math.tanh %6 : vector<64x128xf32>
    %c0_5 = arith.constant 0 : index
    %c0_6 = arith.constant 0 : index
    %8 = vector.load %arg5[%c0_5, %c0_6] : memref<64x64xbf16, #tpu.memory_space<vmem>>, vector<64x64xbf16>
    %9 = arith.truncf %7 : vector<64x128xf32> to vector<64x128xbf16>
    %cst_7 = arith.constant dense<0.000000e+00> : vector<64x128xf32>
    %10 = tpu.matmul %8, %9, %cst_7 {dimension_numbers = #tpu.dot_dimension_numbers<[1], [0], [0], [1], [0, 0, 1, 1], [], []>} : vector<64x64xbf16>, vector<64x128xbf16>, vector<64x128xf32> -> vector<64x128xf32>
    %c0_8 = arith.constant 0 : index
    %c0_9 = arith.constant 0 : index
    %11 = vector.load %arg6[%c0_8, %c0_9] : memref<64x1xf32, #tpu.memory_space<vmem>>, vector<64x1xf32>
    %12 = vector.broadcast %11 : vector<64x1xf32> to vector<64x128xf32>
    %13 = arith.addf %10, %12 : vector<64x128xf32>
    %14 = math.tanh %13 : vector<64x128xf32>
    %c0_10 = arith.constant 0 : index
    %c0_11 = arith.constant 0 : index
    %15 = vector.load %arg7[%c0_10, %c0_11] : memref<7x64xbf16, #tpu.memory_space<vmem>>, vector<7x64xbf16>
    %16 = arith.truncf %14 : vector<64x128xf32> to vector<64x128xbf16>
    %cst_12 = arith.constant dense<0.000000e+00> : vector<7x128xf32>
    %17 = tpu.matmul %15, %16, %cst_12 {dimension_numbers = #tpu.dot_dimension_numbers<[1], [0], [0], [1], [0, 0, 1, 1], [], []>} : vector<7x64xbf16>, vector<64x128xbf16>, vector<7x128xf32> -> vector<7x128xf32>
    %c0_13 = arith.constant 0 : index
    %c0_14 = arith.constant 0 : index
    %18 = vector.load %arg8[%c0_13, %c0_14] : memref<7x1xf32, #tpu.memory_space<vmem>>, vector<7x1xf32>
    %19 = vector.broadcast %18 : vector<7x1xf32> to vector<7x128xf32>
    %20 = arith.addf %17, %19 : vector<7x128xf32>
    %21 = vector.extract_strided_slice %20 {offsets = [0, 0], sizes = [6, 128], strides = [1, 1]} : vector<7x128xf32> to vector<6x128xf32>
    %22 = vector.extract_strided_slice %20 {offsets = [6, 0], sizes = [1, 128], strides = [1, 1]} : vector<7x128xf32> to vector<1x128xf32>
    %cst_15 = arith.constant dense<0xFF800000> : vector<128xf32>
    %23 = vector.multi_reduction <maximumf>, %21, %cst_15 [0] : vector<6x128xf32> to vector<128xf32>
    %24 = vector.shape_cast %23 : vector<128xf32> to vector<1x128xf32>
    %25 = vector.broadcast %24 : vector<1x128xf32> to vector<6x128xf32>
    %26 = arith.subf %21, %25 : vector<6x128xf32>
    %27 = math.exp %26 : vector<6x128xf32>
    %cst_16 = arith.constant dense<0.000000e+00> : vector<128xf32>
    %28 = vector.multi_reduction <add>, %27, %cst_16 [0] : vector<6x128xf32> to vector<128xf32>
    %29 = vector.shape_cast %28 : vector<128xf32> to vector<1x128xf32>
    %30 = math.log %29 : vector<1x128xf32>
    %31 = arith.mulf %27, %26 : vector<6x128xf32>
    %cst_17 = arith.constant dense<0.000000e+00> : vector<128xf32>
    %32 = vector.multi_reduction <add>, %31, %cst_17 [0] : vector<6x128xf32> to vector<128xf32>
    %33 = vector.shape_cast %32 : vector<128xf32> to vector<1x128xf32>
    %34 = arith.divf %33, %29 : vector<1x128xf32>
    %35 = arith.subf %30, %34 : vector<1x128xf32>
    %c0_18 = arith.constant 0 : index
    %c0_19 = arith.constant 0 : index
    %36 = vector.load %arg2[%c0_18, %c0_19] : memref<1x128xi32, #tpu.memory_space<vmem>>, vector<1x128xi32>
    %37 = tpu.iota {dimensions = array<i32: 0>} : vector<6x128xi32>
    %38 = vector.broadcast %36 : vector<1x128xi32> to vector<6x128xi32>
    %39 = arith.cmpi eq, %37, %38 : vector<6x128xi32>
    %40 = arith.extui %39 : vector<6x128xi1> to vector<6x128xi32>
    %41 = arith.sitofp %40 : vector<6x128xi32> to vector<6x128xf32>
    %42 = arith.mulf %41, %26 : vector<6x128xf32>
    %cst_20 = arith.constant dense<0.000000e+00> : vector<128xf32>
    %43 = vector.multi_reduction <add>, %42, %cst_20 [0] : vector<6x128xf32> to vector<128xf32>
    %44 = vector.shape_cast %43 : vector<128xf32> to vector<1x128xf32>
    %45 = arith.subf %44, %30 : vector<1x128xf32>
    %46 = tpu.concatenate %45, %22, %35 in 0 : vector<1x128xf32>, vector<1x128xf32>, vector<1x128xf32> -> vector<3x128xf32>
    %c0_21 = arith.constant 0 : index
    %c0_22 = arith.constant 0 : index
    %47 = vector.load %arg9[%c0_21, %c0_22] : memref<3x128xf32, #tpu.memory_space<vmem>>, vector<3x128xf32>
    tpu.vector_store %arg9[%c0_21, %c0_22], %46 {strides = array<i32>} : memref<3x128xf32, #tpu.memory_space<vmem>>, vector<3x128xf32>,
    return
  }
  func.func @transform_0(%arg0: i32) -> (i32, i32) {
    %c0_i32 = arith.constant 0 : i32
    %c0_i32_0 = arith.constant 0 : i32
    return %arg0, %c0_i32 : i32, i32
  }
  func.func @transform_1(%arg0: i32) -> (i32, i32) {
    %c0_i32 = arith.constant 0 : i32
    %c0_i32_0 = arith.constant 0 : i32
    return %c0_i32, %arg0 : i32, i32
  }
  func.func @transform_2(%arg0: i32) -> (i32, i32) {
    %c0_i32 = arith.constant 0 : i32
    %c0_i32_0 = arith.constant 0 : i32
    %c0_i32_1 = arith.constant 0 : i32
    return %c0_i32, %c0_i32_0 : i32, i32
  }
  func.func @transform_3(%arg0: i32) -> (i32, i32) {
    %c0_i32 = arith.constant 0 : i32
    %c0_i32_0 = arith.constant 0 : i32
    %c0_i32_1 = arith.constant 0 : i32
    return %c0_i32, %c0_i32_0 : i32, i32
  }
  func.func @transform_4(%arg0: i32) -> (i32, i32) {
    %c0_i32 = arith.constant 0 : i32
    %c0_i32_0 = arith.constant 0 : i32
    %c0_i32_1 = arith.constant 0 : i32
    return %c0_i32, %c0_i32_0 : i32, i32
  }
  func.func @transform_5(%arg0: i32) -> (i32, i32) {
    %c0_i32 = arith.constant 0 : i32
    %c0_i32_0 = arith.constant 0 : i32
    %c0_i32_1 = arith.constant 0 : i32
    return %c0_i32, %c0_i32_0 : i32, i32
  }
  func.func @transform_6(%arg0: i32) -> (i32, i32) {
    %c0_i32 = arith.constant 0 : i32
    %c0_i32_0 = arith.constant 0 : i32
    %c0_i32_1 = arith.constant 0 : i32
    return %c0_i32, %c0_i32_0 : i32, i32
  }
  func.func @transform_7(%arg0: i32) -> (i32, i32) {
    %c0_i32 = arith.constant 0 : i32
    %c0_i32_0 = arith.constant 0 : i32
    %c0_i32_1 = arith.constant 0 : i32
    return %c0_i32, %c0_i32_0 : i32, i32
  }
  func.func @transform_8(%arg0: i32) -> (i32, i32) {
    %c0_i32 = arith.constant 0 : i32
    %c0_i32_0 = arith.constant 0 : i32
    return %c0_i32, %arg0 : i32, i32
  }
}

</mosaic_0001>

<bundles_post_ra>
// kernel: actor_critic_evaluate.1
= control target key start
LH: loop header
LB: loop body
LE: loop exit
PB: predicated region body
PF: predicated region fallthrough
CT: control target
= control target key end

     0   :  { %vm130_vm0 = vcmask 31744   ;;  %v543_v16 = vmov 0   ;;  %vm284_vm1 = vcmask 523264   ;;  %vm361_vm2 = vcmask 1045504   ;;  %s748_s0 = inlined_call_operand.vmem [shape: f32[128,4], index: 0, kind: input, shape index: {}]   ;;  %s749_s3 = inlined_call_operand.vmem [shape: f32[64,1], index: 3, kind: input, shape index: {}]   ;;  %s750_s5 = inlined_call_operand.vmem [shape: f32[64,1], index: 5, kind: input, shape index: {}]   ;;  %s751_s2 = inlined_call_operand.vmem [shape: bf16[64,4], index: 2, kind: input, shape index: {}]   ;;  %s752_s7 = inlined_call_operand.vmem [shape: f32[7,1], index: 7, kind: input, shape index: {}]   ;;  %s753_s4 = inlined_call_operand.vmem [shape: bf16[64,64], index: 4, kind: input, shape index: {}]   ;;  %s754_s1 = inlined_call_operand.vmem [shape: s32[1,128], index: 1, kind: input, shape index: {}]   ;;  %s755_s6 = inlined_call_operand.vmem [shape: bf16[7,64], index: 6, kind: input, shape index: {}]   ;;  %s756_s8 = inlined_call_operand.vmem [shape: f32[3,128], index: 8, kind: output, shape index: {}]  }
   0x1   :  { %v44_v0 = vld [vmem:[%s748_s0 + $0x70] sm:$0xff]  ;;  %v45_v1 = vld [vmem:[%s748_s0 + $0x78] sm:$0xff]  ;;  %v42_v3 = vld [vmem:[%s748_s0 + $0x60] sm:$0xff]  ;;  %501 = vset.pattern.permute.xlu0 %v543_v16  ;;  %502 = vset.pattern.permute.xlu1 %v543_v16  ;;  %vm424_vm8 = vcmask 1040384   ;;  %vm426_vm9 = vcmask 1041408  }
   0x2   :  { %v53_v2 = vpack.c.bf16 %v45_v1, %v44_v0  ;;  %v43_v4 = vld [vmem:[%s748_s0 + $0x68] sm:$0xff]  ;;  %v40_v8 = vld [vmem:[%s748_s0 + $0x50] sm:$0xff]  ;;  %v41_v9 = vld [vmem:[%s748_s0 + $0x58] sm:$0xff]  ;;  %503 = vset.pattern.permute.xlu2 %v543_v16 }
   0x3   :  { %v52_v6 = vpack.c.bf16 %v43_v4, %v42_v3  ;;  %v51_v10 = vpack.c.bf16 %v41_v9, %v40_v8  ;;  %v38_v12 = vld [vmem:[%s748_s0 + $0x40] sm:$0xff]  ;;  %v39_v13 = vld [vmem:[%s748_s0 + $0x48] sm:$0xff]  ;;  %v68_v14 = vld [vmem:[%s749_s3 + $0x30] sm:$0xff] }
   0x4   :  { %v165_v5 = vsel %vm130_vm0, %v53_v2, 0  ;;  %v50_v15 = vpack.c.bf16 %v39_v13, %v38_v12  ;;  %102 = vperm.xlu0 %501, %v68_v14   ;;  %v36_v18 = vld [vmem:[%s748_s0 + $0x30] sm:$0xff]  ;;  %v37_v19 = vld [vmem:[%s748_s0 + $0x38] sm:$0xff]  ;;  %v66_v20 = vld [vmem:[%s749_s3 + $0x20] sm:$0xff] }
   0x5   :  { %484 = vmatpush.bf16.xpose.msra.mxu3 %v165_v5  ;;  %167 = vmatpush.bf16.xpose.msra.mxu0 %v165_v5  ;;  %v162_v7 = vsel %vm130_vm0, %v52_v6, 0  ;;  %v159_v11 = vsel %vm130_vm0, %v51_v10, 0  ;;  %v49_v21 = vpack.c.bf16 %v37_v19, %v36_v18  ;;  %v34_v23 = vld [vmem:[%s748_s0 + $0x20] sm:$0xff]  ;;  %v35_v24 = vld [vmem:[%s748_s0 + $0x28] sm:$0xff]  ;;  %v69_v25 = vld [vmem:[%s749_s3 + $0x38] sm:$0xff] }
   0x6   :  { %483 = vmatpush.bf16.xpose.msra.mxu2 %v165_v5  ;;  %v156_v17 = vsel %vm130_vm0, %v50_v15, 0  ;;  %92 = vperm.xlu1 %502, %v66_v20   ;;  %v67_v26 = vld [vmem:[%s749_s3 + $0x28] sm:$0xff]  ;;  %v48_v27 = vpack.c.bf16 %v35_v24, %v34_v23  ;;  %v32_v29 = vld [vmem:[%s748_s0 + $0x10] sm:$0xff]  ;;  %v33_v30 = vld [vmem:[%s748_s0 + $0x18] sm:$0xff] }
   0x7   :  { %v153_v22 = vsel %vm130_vm0, %v49_v21, 0  ;;  %v62_v31 = vld [vmem:[%s749_s3] sm:$0xff]  ;;  %v63_v32 = vld [vmem:[%s749_s3 + $0x8] sm:$0xff]  ;;  %v47_v33 = vpack.c.bf16 %v33_v30, %v32_v29  ;;  %v223_v37 = vld [vmem:[%s750_s5 + $0x38] sm:$0xff] }
   0x8   :  { %v150_v28 = vsel %vm130_vm0, %v48_v27, 0  ;;  %v30_v35 = vld [vmem:[%s748_s0] sm:$0xff]  ;;  %v31_v36 = vld [vmem:[%s748_s0 + $0x8] sm:$0xff]  ;;  %v64_v39 = vld [vmem:[%s749_s3 + $0x10] sm:$0xff] }
   0x9   :  { %v147_v34 = vsel %vm130_vm0, %v47_v33, 0  ;;  %v220_v38 = vld [vmem:[%s750_s5 + $0x20] sm:$0xff]  ;;  %v46_v40 = vpack.c.bf16 %v31_v36, %v30_v35  ;;  %82 = vperm.xlu2 %503, %v64_v39   ;;  %v218_v42 = vld [vmem:[%s750_s5 + $0x10] sm:$0xff]  ;;  %v219_v43 = vld [vmem:[%s750_s5 + $0x18] sm:$0xff] }
   0xa   :  { %v65_v44 = vld [vmem:[%s749_s3 + $0x18] sm:$0xff]  ;;  %v477_v45 = vld [vmem:[%s751_s2 + $0x10] sm:$0xff]  ;;  %v475_v46 = vld [vmem:[%s751_s2] sm:$0xff] }
   0xb   :  { %v144_v41 = vsel %vm130_vm0, %v46_v40, 0  ;;  %v476_v47 = vld [vmem:[%s751_s2 + $0x8] sm:$0xff]  ;;  %v339_v49 = vld [vmem:[%s752_s7] sm:$0x7f]  ;;  %v222_v50 = vld [vmem:[%s750_s5 + $0x30] sm:$0xff] }
   0xc   :  { %107 = vperm.xlu0 %501, %v69_v25   ;;  %v217_v48 = vld [vmem:[%s750_s5 + $0x8] sm:$0xff]  ;;  %v478_v52 = vld [vmem:[%s751_s2 + $0x18] sm:$0xff]  ;;  %v216_v53 = vld [vmem:[%s750_s5] sm:$0xff] }
   0xd   :  { %486 = vmatpush.bf16.xpose.msra.mxu3 %v162_v7  ;;  %168 = vmatpush.bf16.xpose.msra.mxu0 %v162_v7  ;;  %v221_v51 = vld [vmem:[%s750_s5 + $0x28] sm:$0xff]  ;;  %v482_v29 = vld [vmem:[%s753_s4 + $0x18] sm:$0xff] }
   0xe   :  { %485 = vmatpush.bf16.xpose.msra.mxu2 %v162_v7  ;;  %97 = vperm.xlu1 %502, %v67_v26   ;;  %v479_v26 = vld [vmem:[%s753_s4] sm:$0xff]  ;;  %v480_v27 = vld [vmem:[%s753_s4 + $0x8] sm:$0xff] }
  0x11   :  { %87 = vperm.xlu2 %503, %v65_v44  }
  0x14   :  { %72 = vperm.xlu0 %501, %v62_v31  }
  0x15   :  { %488 = vmatpush.bf16.xpose.msra.mxu3 %v159_v11  ;;  %169 = vmatpush.bf16.xpose.msra.mxu0 %v159_v11 }
  0x16   :  { %487 = vmatpush.bf16.xpose.msra.mxu2 %v159_v11  ;;  %77 = vperm.xlu1 %502, %v63_v32  }
  0x19   :  { %256 = vperm.xlu2 %503, %v222_v50  }
  0x1c   :  { %261 = vperm.xlu0 %501, %v223_v37  }
  0x1d   :  { %490 = vmatpush.bf16.xpose.msra.mxu3 %v156_v17  ;;  %170 = vmatpush.bf16.xpose.msra.mxu0 %v156_v17 }
  0x1e   :  { %489 = vmatpush.bf16.xpose.msra.mxu2 %v156_v17  ;;  %246 = vperm.xlu1 %502, %v220_v38  }
  0x21   :  { %251 = vperm.xlu2 %503, %v221_v51  }
  0x24   :  { %236 = vperm.xlu0 %501, %v218_v42  }
  0x25   :  { %492 = vmatpush.bf16.xpose.msra.mxu3 %v153_v22  ;;  %171 = vmatpush.bf16.xpose.msra.mxu0 %v153_v22 }
  0x26   :  { %491 = vmatpush.bf16.xpose.msra.mxu2 %v153_v22  ;;  %241 = vperm.xlu1 %502, %v219_v43  }
  0x29   :  { %226 = vperm.xlu2 %503, %v216_v53  }
  0x2c   :  { %231 = vperm.xlu0 %501, %v217_v48  }
  0x2d   :  { %494 = vmatpush.bf16.xpose.msra.mxu3 %v150_v28  ;;  %172 = vmatpush.bf16.xpose.msra.mxu0 %v150_v28 }
  0x2e   :  { %493 = vmatpush.bf16.xpose.msra.mxu2 %v150_v28  ;;  %342 = vperm.xlu1 %502, %v339_v49   ;;  %v481_v28 = vld [vmem:[%s753_s4 + $0x10] sm:$0xff] }
  0x35   :  { %496 = vmatpush.bf16.xpose.msra.mxu3 %v147_v34  ;;  %173 = vmatpush.bf16.xpose.msra.mxu0 %v147_v34 }
  0x36   :  { %495 = vmatpush.bf16.xpose.msra.mxu2 %v147_v34 }
  0x3d   :  { %498 = vmatpush.bf16.xpose.msra.mxu3 %v144_v41  ;;  %174 = vmatpush.bf16.xpose.msra.mxu0 %v144_v41 }
  0x3e   :  { %497 = vmatpush.bf16.xpose.msra.mxu2 %v144_v41 }
  0x44   :  { %451 = vmatmul.msk.bf16.vlgmr.msra.gmra.mxu3 %vm130_vm0, %v477_v45  ;;  %449 = vmatmul.msk.bf16.vlgmr.msra.gmra.mxu0 %vm130_vm0, %v475_v46 }
  0x45   :  { %450 = vmatmul.msk.bf16.vlgmr.msra.gmra.mxu2 %vm130_vm0, %v476_v47 }
  0x54   :  { %452 = vmatmul.msk.bf16.gmra.mxu3 %vm130_vm0, %v478_v52 }
  0x63   :  { %v83_v60 = vpop.permute.xlu2 %82 }
  0x6b   :  { %v88_v6 = vpop.permute.xlu2 %87 }
  0x73   :  { %v257_v37 = vpop.permute.xlu2 %256 }
  0x76   :  { %v103_v56 = vpop.permute.xlu0 %102 }
  0x78   :  { %v93_v57 = vpop.permute.xlu1 %92 }
  0x7b   :  { %v252_v42 = vpop.permute.xlu2 %251 }
  0x7e   :  { %v108_v62 = vpop.permute.xlu0 %107 }
  0x80   :  { %v98_v63 = vpop.permute.xlu1 %97 }
  0x86   :  { %v73_v10 = vpop.permute.xlu0 %72 }
  0x88   :  { %v78_v12 = vpop.permute.xlu1 %77 }
  0x8e   :  { %v262_v36 = vpop.permute.xlu0 %261 }
  0x90   :  { %v247_v39 = vpop.permute.xlu1 %246 }
  0x96   :  { %v237_v40 = vpop.permute.xlu0 %236 }
  0x98   :  { %v242_v47 = vpop.permute.xlu1 %241 }
  0x9e   :  { %v232_v51 = vpop.permute.xlu0 %231 }
  0xc1   :  { %v176_v61 = vpop.f32.mrf.mxu0 }
  0xc2   :  { %v177_v13 = vadd.f32 %v176_v61, %v73_v10 }
  0xc7   :  { %v186_v54 = vpop.f32.mrf.mxu3 }
  0xc8   :  { %v181_v58 = vpop.f32.mrf.mxu2  ;;  %v187_v5 = vadd.f32 %v186_v54, %v93_v57  ;;  %v227_v54 = vpop.permute.xlu2 %226 }
  0xc9   :  { %v182_v7 = vadd.f32 %v181_v58, %v83_v60  ;;  %v178_v9 = vpop.f32.mrf.mxu0 }
  0xca   :  { %v179_v15 = vadd.f32 %v178_v9, %v78_v12 }
  0xcf   :  { %v188_v55 = vpop.f32.mrf.mxu3 }
  0xd0   :  { %v189_v2 = vadd.f32 %v188_v55, %v98_v63  ;;  %v183_v4 = vpop.f32.mrf.mxu2 }
  0xd1   :  { %v184_v8 = vadd.f32 %v183_v4, %v88_v6 }
  0xd7   :  { %v191_v59 = vpop.f32.mrf.mxu3 }
  0xd8   :  { %v192_v0 = vadd.f32 %v191_v59, %v103_v56 }
  0xda   :  { %505 = vtanh.f32 %v192_v0 }
  0xdf   :  { %v193_v1 = vpop.f32.mrf.mxu3 }
  0xe0   :  { %v194_v3 = vadd.f32 %v193_v1, %v108_v62  ;;  %v506_v11 = vpop.eup %505 }
  0xe2   :  { %507 = vtanh.f32 %v194_v3  ;;  %v343_v3 = vpop.permute.xlu1 %342 }
  0xe3   :  { %509 = vtanh.f32 %v189_v2  ;;  %v334_v2 = vld [vmem:[%s755_s6] sm:$0xf] }
  0xe4   :  { %511 = vtanh.f32 %v187_v5 }
  0xe5   :  { %513 = vtanh.f32 %v182_v7 }
  0xe6   :  { %515 = vtanh.f32 %v184_v8 }
  0xe7   :  { %517 = vtanh.f32 %v177_v13 }
  0xe8   :  { %v508_v14 = vpop.eup %507  ;;  %519 = vtanh.f32 %v179_v15 }
  0xe9   :  { %v215_v16 = vpack.c.bf16 %v508_v14, %v506_v11  ;;  %v510_v17 = vpop.eup %509  ;;  %v406_v14 = vlaneseq }
  0xea   :  { %v512_v18 = vpop.eup %511 }
  0xeb   :  { %301 = vmatpush.bf16.msra.mxu1 %v215_v16  ;;  %v514_v19 = vpop.eup %513  ;;  %v214_v20 = vpack.c.bf16 %v510_v17, %v512_v18  ;;  %v407_v17 = vshrl.u32 %v406_v14, 7  ;;  %v504_v18 = vld [vmem:[%s754_s1] ss:$0 sm:$0xff] }
  0xec   :  { %v516_v21 = vpop.eup %515 }
  0xed   :  { %v518_v22 = vpop.eup %517  ;;  %v213_v23 = vpack.c.bf16 %v516_v21, %v514_v19  ;;  %vm409_vm3 = vcmp.eq.s32.totalorder %v407_v17, %v504_v18  ;;  %v544_v19 = vmov 0.0  }
  0xee   :  { %v520_v24 = vpop.eup %519 }
  0xef   :  { %302 = vmatpush.bf16.msra.mxu1 %v214_v20  ;;  %v212_v25 = vpack.c.bf16 %v520_v24, %v518_v22  ;;  %v474_v20 = vsel %vm409_vm3, 1.0, %v544_v19 }
  0xf3   :  { %303 = vmatpush.bf16.msra.mxu1 %v213_v23 }
  0xf7   :  { %304 = vmatpush.bf16.msra.mxu1 %v212_v25 }
  0xfa   :  { %469 = vmatmul.msk.bf16.vlgmr.msra.gmra.mxu1 %vm284_vm1, %v479_v26 }
 0x10a   :  { %470 = vmatmul.msk.bf16.gmra.mxu1 %vm284_vm1, %v480_v27 }
 0x11a   :  { %471 = vmatmul.msk.bf16.gmra.mxu1 %vm284_vm1, %v481_v28 }
 0x12a   :  { %472 = vmatmul.msk.bf16.gmra.mxu1 %vm284_vm1, %v482_v29 }
 0x177   :  { %v306_v30 = vpop.f32.mrf.mxu1 }
 0x178   :  { %v307_v57 = vadd.f32 %v306_v30, %v227_v54 }
 0x17f   :  { %v308_v31 = vpop.f32.mrf.mxu1 }
 0x180   :  { %v309_v53 = vadd.f32 %v308_v31, %v232_v51 }
 0x187   :  { %v311_v32 = vpop.f32.mrf.mxu1 }
 0x188   :  { %v312_v49 = vadd.f32 %v311_v32, %v237_v40 }
 0x18f   :  { %v313_v33 = vpop.f32.mrf.mxu1 }
 0x190   :  { %v314_v48 = vadd.f32 %v313_v33, %v242_v47 }
 0x197   :  { %v316_v34 = vpop.f32.mrf.mxu1 }
 0x198   :  { %v317_v46 = vadd.f32 %v316_v34, %v247_v39 }
 0x19f   :  { %v318_v35 = vpop.f32.mrf.mxu1 }
 0x1a0   :  { %v319_v44 = vadd.f32 %v318_v35, %v252_v42 }
 0x1a7   :  { %v321_v38 = vpop.f32.mrf.mxu1 }
 0x1a8   :  { %v322_v41 = vadd.f32 %v321_v38, %v257_v37 }
 0x1aa   :  { %521 = vtanh.f32 %v322_v41 }
 0x1af   :  { %v323_v43 = vpop.f32.mrf.mxu1 }
 0x1b0   :  { %v324_v45 = vadd.f32 %v323_v43, %v262_v36  ;;  %v522_v50 = vpop.eup %521 }
 0x1b2   :  { %523 = vtanh.f32 %v324_v45 }
 0x1b3   :  { %525 = vtanh.f32 %v319_v44 }
 0x1b4   :  { %527 = vtanh.f32 %v317_v46 }
 0x1b5   :  { %529 = vtanh.f32 %v314_v48 }
 0x1b6   :  { %531 = vtanh.f32 %v312_v49 }
 0x1b7   :  { %533 = vtanh.f32 %v309_v53 }
 0x1b8   :  { %v524_v52 = vpop.eup %523  ;;  %535 = vtanh.f32 %v307_v57 }
 0x1b9   :  { %v338_v55 = vpack.c.bf16 %v524_v52, %v522_v50  ;;  %v526_v56 = vpop.eup %525 }
 0x1ba   :  { %v528_v58 = vpop.eup %527 }
 0x1bb   :  { %352 = vmatpush.bf16.msrb.mxu2 %v338_v55  ;;  %v337_v59 = vpack.c.bf16 %v526_v56, %v528_v58  ;;  %v530_v60 = vpop.eup %529 }
 0x1bc   :  { %v532_v61 = vpop.eup %531 }
 0x1bd   :  { %v336_v62 = vpack.c.bf16 %v530_v60, %v532_v61  ;;  %v534_v63 = vpop.eup %533 }
 0x1be   :  { %v536_v0 = vpop.eup %535 }
 0x1bf   :  { %353 = vmatpush.bf16.msrb.mxu2 %v337_v59  ;;  %v335_v1 = vpack.c.bf16 %v534_v63, %v536_v0 }
 0x1c3   :  { %354 = vmatpush.bf16.msrb.mxu2 %v336_v62 }
 0x1c7   :  { %355 = vmatpush.bf16.msrb.mxu2 %v335_v1 }
 0x1ca   :  { %473 = vmatmul.msk.bf16.vlgmr.msrb.gmra.mxu2 %vm284_vm1, %v334_v2 }
 0x24d   :  { %v357_v4 = vpop.f32.mrf.mxu2 }
 0x24e   :  { %v733_v5 = vadd.f32 %v357_v4, %v343_v3 }
 0x250   :  { %v362_v6 = vsel %vm361_vm2, %v733_v5, -inf  ;;  %v422_v59 = vrot.slane %v733_v5, 5 }
 0x251   :  { %v363_v7 = vrot.slane %v362_v6, 4 }
 0x253   :  { %v364_v8 = vmax.f32 %v362_v6, %v363_v7 }
 0x255   :  { %v365_v9 = vrot.slane %v364_v8, 2  ;;  %v359_v10 = vpop.f32.mrf.mxu2 }
 0x257   :  { %v366_v11 = vmax.f32 %v364_v8, %v365_v9 }
 0x259   :  { %v367_v12 = vrot.slane %v366_v11, 1 }
 0x25b   :  { %v368_v13 = vmax.f32 %v366_v11, %v367_v12 }
 0x25d   :  { %v369_v15 = vsub.f32 %v733_v5, %v368_v13 }
 0x25f   :  { %v370_v16 = vmul.f32 1.442695, %v369_v15  ;;  %v412_v24 = vmul.f32 %v474_v20, %v369_v15 }
 0x261   :  { %537 = vpow2.f32 %v370_v16  ;;  %v413_v28 = vsel %vm361_vm2, %v412_v24, 0.0 }
 0x262   :  { %v414_v31 = vrot.slane %v413_v28, 4 }
 0x264   :  { %v415_v35 = vadd.f32 %v414_v31, %v413_v28 }
 0x266   :  { %v416_v37 = vrot.slane %v415_v35, 2 }
 0x267   :  { %v538_v21 = vpop.eup %537 }
 0x268   :  { %v372_v22 = vsel %vm361_vm2, %v538_v21, 0.0  ;;  %v381_v25 = vmul.f32 %v538_v21, %v369_v15  ;;  %v417_v40 = vadd.f32 %v416_v37, %v415_v35 }
 0x269   :  { %v373_v23 = vrot.slane %v372_v22, 4 }
 0x26a   :  { %v382_v29 = vsel %vm361_vm2, %v381_v25, 0.0  ;;  %v418_v46 = vrot.slane %v417_v40, 1 }
 0x26b   :  { %v374_v26 = vadd.f32 %v373_v23, %v372_v22  ;;  %v383_v33 = vrot.slane %v382_v29, 4 }
 0x26c   :  { %v419_v53 = vadd.f32 %v418_v46, %v417_v40 }
 0x26d   :  { %v375_v27 = vrot.slane %v374_v26, 2  ;;  %v384_v36 = vadd.f32 %v383_v33, %v382_v29 }
 0x26f   :  { %v376_v30 = vadd.f32 %v375_v27, %v374_v26  ;;  %v385_v38 = vrot.slane %v384_v36, 2 }
 0x271   :  { %v377_v32 = vrot.slane %v376_v30, 1  ;;  %v386_v41 = vadd.f32 %v385_v38, %v384_v36 }
 0x273   :  { %v378_v34 = vadd.f32 %v377_v32, %v376_v30  ;;  %v387_v47 = vrot.slane %v386_v41, 1 }
 0x275   :  { %539 = vrcp.f32 %v378_v34  ;;  %v400_v45 = vand.u32 2147483648, %v378_v34  ;;  %v398_v49 = vand.u32 2147483647, %v378_v34  ;;  %vm394_vm5 = vweird.f32 %v378_v34 }
 0x276   :  { %541 = vlog2.f32 %v378_v34  ;;  %v388_v54 = vadd.f32 %v387_v47, %v386_v41 }
 0x277   :  { %v401_v52 = vor.u32 1.1754944e-38, %v400_v45  ;;  %vm399_vm7 = vcmp.eq.f32.partialorder %v398_v49, 8.507059e+37 }
 0x27b   :  { %v540_v39 = vpop.eup %539 }
 0x27c   :  { %v390_v42 = vmul.f32 %v540_v39, %v378_v34  ;;  %v542_v43 = vpop.eup %541  ;;  %vm395_vm4 = vweird.f32 %v540_v39 }
 0x27d   :  { %v380_v50 = vmul.f32 0.6931472, %v542_v43  ;;  %vm396_vm6 = vmor %vm394_vm5, %vm395_vm4 }
 0x27e   :  { %v391_v44 = vsub.f32 1.0, %v390_v42 }
 0x27f   :  { %v420_v57 = vsub.f32 %v419_v53, %v380_v50 }
 0x280   :  { %v392_v48 = vmul.f32 %v540_v39, %v391_v44 }
 0x281   :  { %v425_v61 = vsel %vm424_vm8, %v420_v57, %v422_v59 }
 0x282   :  { %v393_v51 = vadd.f32 %v540_v39, %v392_v48 }
 0x284   :  { %v397_v55 = vsel %vm396_vm6, %v540_v39, %v393_v51 }
 0x285   :  { %v402_v56 = vsel %vm399_vm7, %v401_v52, %v397_v55 }
 0x286   :  { %v403_v58 = vmul.f32 %v402_v56, %v388_v54 }
 0x288   :  { %v404_v60 = vsub.f32 %v380_v50, %v403_v58 }
 0x28a   :  { %v427_v62 = vsel %vm426_vm9, %v425_v61, %v404_v60 }
 0x28b   :  { %428 = vst [vmem:[%s756_s8] sm:$0x7] %v427_v62 }

</bundles_post_ra>
